<compile_context>
chip_gen: v6e
topology: v6e:2x2x1
jax: 0.10.0
libtpu: 0.0.40
codegen_flags: <defaults>
</compile_context>

<pallas_src>
import functools

import jax
import jax.numpy as jnp
from jax.experimental import pallas as pl
from jax.experimental.pallas import tpu as pltpu


def _tv_kernel(x_ref, m_ref, out_ref, acc_h_ref, acc_w_ref, *, w):
    """One block of tn flattened planes.

    x_ref:   (tn, L) input block (planes flattened to L = H*W, lane-dense).
    m_ref:   (2, L)  f32 seam masks; row 0 = vertical-diff valid, row 1 = horizontal.
    out_ref: (1, 2, 128) f32; row 0 broadcast h_sum, row 1 broadcast w_sum.
    acc_*:   (tn, L) f32 elementwise accumulators (persist across the grid).
    """
    a = pl.program_id(1)
    num_acc = pl.num_programs(1)

    @pl.when(a == 0)
    def _init():
        acc_h_ref[...] = jnp.zeros_like(acc_h_ref)
        acc_w_ref[...] = jnp.zeros_like(acc_w_ref)

    x = x_ref[...]                      # (tn, L), kept in the input dtype
    L = x.shape[-1]

    # Shifted views via XLU lane rotations (wrap-around handled by the masks).
    x_right = pltpu.roll(x, shift=(L - 1) % L, axis=1)   # element at i+1
    x_down = pltpu.roll(x, shift=(L - w) % L, axis=1)    # element at i+W (next row)

    dw = x_right - x                    # horizontal difference (input dtype)
    dh = x_down - x                     # vertical difference (input dtype)

    hm = m_ref[0:1, :]                  # (1, L) 1.0 where vertical diff is valid
    wm = m_ref[1:2, :]                  # (1, L) 1.0 where horizontal diff is valid

    dh32 = dh.astype(jnp.float32)
    dw32 = dw.astype(jnp.float32)

    # Elementwise (VPU) accumulation; masked wrap terms are real finite data,
    # so multiply-by-zero masking is exact.
    acc_h_ref[...] += dh32 * dh32 * hm
    acc_w_ref[...] += dw32 * dw32 * wm

    @pl.when(a == num_acc - 1)
    def _finalize():
        h_tot = jnp.sum(acc_h_ref[...])            # single cross-lane reduce
        w_tot = jnp.sum(acc_w_ref[...])
        row = jax.lax.broadcasted_iota(jnp.int32, out_ref.shape, 1)
        out_ref[...] = jnp.where(row == 0, h_tot, w_tot)


def _pick_plane_tile(n_planes, plane_bytes, budget_bytes):
    """Largest divisor of n_planes that fits the block budget and keeps the
    sublane dim either a multiple of 8 or the full extent."""
    divisors = [d for d in range(1, n_planes + 1) if n_planes % d == 0]
    fitting = [d for d in divisors if d * plane_bytes <= budget_bytes]
    aligned = [d for d in fitting if d % 8 == 0 or d == n_planes]
    if aligned:
        return max(aligned)
    if fitting:
        return max(fitting)
    return n_planes


def tv_loss(x, tv_loss_weight=1.0, *, block_budget_bytes=4 * 1024 * 1024):
    """TV loss matching the PyTorch TVLoss.forward semantics. x: (B, C, H, W)."""
    B, C, H, W = x.shape
    N = B * C
    L = H * W

    # Planes flattened to a dense lane axis (contiguous reshape, no data copy).
    xf = x.reshape(N, L)

    # Seam masks: 1.0 where the rolled neighbour is a true in-plane neighbour.
    idx = jnp.arange(L, dtype=jnp.int32)
    h_mask = (idx < (H - 1) * W).astype(jnp.float32)     # vertical diffs valid
    w_mask = (idx % W != W - 1).astype(jnp.float32)      # horizontal diffs valid
    masks = jnp.stack([h_mask, w_mask], axis=0)          # (2, L)

    plane_bytes = L * x.dtype.itemsize
    # TODO(synk): tile H with a 1-row halo for planes larger than the block
    # budget (e.g. 4K images) so a single plane never has to fit VMEM.
    tn = _pick_plane_tile(N, plane_bytes, block_budget_bytes)
    num_blocks = N // tn
    num_par = 2 if num_blocks % 2 == 0 else 1            # v7x has 2 TensorCores
    num_acc = num_blocks // num_par

    kernel = functools.partial(_tv_kernel, w=W)

    partial_sums = pl.pallas_call(
        kernel,
        out_shape=jax.ShapeDtypeStruct((num_par, 2, 128), jnp.float32),
        grid_spec=pltpu.PrefetchScalarGridSpec(
            num_scalar_prefetch=0,
            grid=(num_par, num_acc),
            in_specs=[
                pl.BlockSpec((tn, L), lambda p, a: (p * num_acc + a, 0)),
                pl.BlockSpec((2, L), lambda p, a: (0, 0)),
            ],
            out_specs=pl.BlockSpec((1, 2, 128), lambda p, a: (p, 0, 0)),
            scratch_shapes=[
                pltpu.VMEM((tn, L), jnp.float32),
                pltpu.VMEM((tn, L), jnp.float32),
            ],
        ),
        compiler_params=pltpu.CompilerParams(
            dimension_semantics=("parallel", "arbitrary"),
            vmem_limit_bytes=32 * 1024 * 1024,
        ),
    )(xf, masks)

    h_tv = jnp.sum(partial_sums[:, 0, 0])
    w_tv = jnp.sum(partial_sums[:, 1, 0])

    # Same normalization (and same H==1 / W==1 divide-by-zero) as the PyTorch module.
    count_h = C * (H - 1) * W
    count_w = C * H * (W - 1)
    return tv_loss_weight * 2.0 * (h_tv / count_h + w_tv / count_w) / B


def tv_loss_ref(x, tv_loss_weight=1.0):
    """Pure-JAX reference (mirrors the PyTorch code)."""
    x = x.astype(jnp.float32)
    B, C, H, W = x.shape
    count_h = C * (H - 1) * W
    count_w = C * H * (W - 1)
    h_tv = jnp.sum((x[:, :, 1:, :] - x[:, :, : H - 1, :]) ** 2)
    w_tv = jnp.sum((x[:, :, :, 1:] - x[:, :, :, : W - 1]) ** 2)
    return tv_loss_weight * 2.0 * (h_tv / count_h + w_tv / count_w) / B


if __name__ == "__main__":
    key = jax.random.PRNGKey(0)
    x = jax.random.normal(key, (2, 4, 16, 16), dtype=jnp.float32)

    out = tv_loss(x, tv_loss_weight=1.0)
    out = jax.block_until_ready(out)

    ref = tv_loss_ref(x, tv_loss_weight=1.0)
    assert jnp.allclose(out, ref, rtol=1e-5, atol=1e-5), (out, ref)

    print("KERNEL_OK")
</pallas_src>

<mosaic_0001>
module attributes {stable_mosaic.version = 11 : i64} {
  func.func @_tv_kernel(%arg0: i32, %arg1: i32, %arg2: memref<8x256xf32, #tpu.memory_space<vmem>>, %arg3: memref<2x256xf32, #tpu.memory_space<vmem>>, %arg4: memref<1x2x128xf32, #tpu.memory_space<vmem>>, %arg5: memref<8x256xf32, #tpu.memory_space<vmem>>, %arg6: memref<8x256xf32, #tpu.memory_space<vmem>>) attributes {dimension_semantics = [#tpu.dimension_semantics<parallel>, #tpu.dimension_semantics<arbitrary>], iteration_bounds = array<i64: 1, 1>, scalar_prefetch = 0 : i64, scratch_operands = 2 : i64, tpu.core_type = #tpu.core_type<tc>, window_params = [{transform_indices = @transform_0, window_bounds = array<i64: 8, 256>}, {pipeline_mode = #tpu.pipeline_mode<synchronous>, transform_indices = @transform_1, window_bounds = array<i64: 2, 256>}, {transform_indices = @transform_2, window_bounds = array<i64: 1, 2, 128>}]} {
    %c0_i32 = arith.constant 0 : i32
    %0 = arith.cmpi eq, %arg1, %c0_i32 : i32
    %1 = arith.extui %0 : i1 to i32
    %c0_i32_0 = arith.constant 0 : i32
    %2 = arith.cmpi ne, %1, %c0_i32_0 : i32
    scf.if %2 {
      %cst = arith.constant 0.000000e+00 : f32
      %25 = vector.broadcast %cst : f32 to vector<8x256xf32>
      %c0_15 = arith.constant 0 : index
      %c0_16 = arith.constant 0 : index
      %26 = vector.load %arg5[%c0_15, %c0_16] : memref<8x256xf32, #tpu.memory_space<vmem>>, vector<8x256xf32>
      tpu.vector_store %arg5[%c0_15, %c0_16], %25 {strides = array<i32>} : memref<8x256xf32, #tpu.memory_space<vmem>>, vector<8x256xf32>,
      %cst_17 = arith.constant 0.000000e+00 : f32
      %27 = vector.broadcast %cst_17 : f32 to vector<8x256xf32>
      %c0_18 = arith.constant 0 : index
      %c0_19 = arith.constant 0 : index
      %28 = vector.load %arg6[%c0_18, %c0_19] : memref<8x256xf32, #tpu.memory_space<vmem>>, vector<8x256xf32>
      tpu.vector_store %arg6[%c0_18, %c0_19], %27 {strides = array<i32>} : memref<8x256xf32, #tpu.memory_space<vmem>>, vector<8x256xf32>,
    } else {
    }
    %c0 = arith.constant 0 : index
    %c0_1 = arith.constant 0 : index
    %3 = vector.load %arg2[%c0, %c0_1] : memref<8x256xf32, #tpu.memory_space<vmem>>, vector<8x256xf32>
    %c255_i32 = arith.constant 255 : i32
    %4 = tpu.dynamic_rotate %3 by %c255_i32 dim 1 : vector<8x256xf32>, i32 -> vector<8x256xf32>
    %c240_i32 = arith.constant 240 : i32
    %5 = tpu.dynamic_rotate %3 by %c240_i32 dim 1 : vector<8x256xf32>, i32 -> vector<8x256xf32>
    %6 = arith.subf %4, %3 : vector<8x256xf32>
    %7 = arith.subf %5, %3 : vector<8x256xf32>
    %c0_2 = arith.constant 0 : index
    %c0_3 = arith.constant 0 : index
    %8 = vector.load %arg3[%c0_2, %c0_3] : memref<2x256xf32, #tpu.memory_space<vmem>>, vector<1x256xf32>
    %c1 = arith.constant 1 : index
    %c0_4 = arith.constant 0 : index
    %9 = vector.load %arg3[%c1, %c0_4] : memref<2x256xf32, #tpu.memory_space<vmem>>, vector<1x256xf32>
    %c0_5 = arith.constant 0 : index
    %c0_6 = arith.constant 0 : index
    %10 = vector.load %arg5[%c0_5, %c0_6] : memref<8x256xf32, #tpu.memory_space<vmem>>, vector<8x256xf32>
    %11 = arith.mulf %7, %7 : vector<8x256xf32>
    %12 = vector.broadcast %8 : vector<1x256xf32> to vector<8x256xf32>
    %13 = arith.mulf %11, %12 : vector<8x256xf32>
    %14 = arith.addf %10, %13 : vector<8x256xf32>
    %c0_7 = arith.constant 0 : index
    %c0_8 = arith.constant 0 : index
    %15 = vector.load %arg5[%c0_7, %c0_8] : memref<8x256xf32, #tpu.memory_space<vmem>>, vector<8x256xf32>
    tpu.vector_store %arg5[%c0_7, %c0_8], %14 {strides = array<i32>} : memref<8x256xf32, #tpu.memory_space<vmem>>, vector<8x256xf32>,
    %c0_9 = arith.constant 0 : index
    %c0_10 = arith.constant 0 : index
    %16 = vector.load %arg6[%c0_9, %c0_10] : memref<8x256xf32, #tpu.memory_space<vmem>>, vector<8x256xf32>
    %17 = arith.mulf %6, %6 : vector<8x256xf32>
    %18 = vector.broadcast %9 : vector<1x256xf32> to vector<8x256xf32>
    %19 = arith.mulf %17, %18 : vector<8x256xf32>
    %20 = arith.addf %16, %19 : vector<8x256xf32>
    %c0_11 = arith.constant 0 : index
    %c0_12 = arith.constant 0 : index
    %21 = vector.load %arg6[%c0_11, %c0_12] : memref<8x256xf32, #tpu.memory_space<vmem>>, vector<8x256xf32>
    tpu.vector_store %arg6[%c0_11, %c0_12], %20 {strides = array<i32>} : memref<8x256xf32, #tpu.memory_space<vmem>>, vector<8x256xf32>,
    %c0_i32_13 = arith.constant 0 : i32
    %22 = arith.cmpi eq, %arg1, %c0_i32_13 : i32
    %23 = arith.extui %22 : i1 to i32
    %c0_i32_14 = arith.constant 0 : i32
    %24 = arith.cmpi ne, %23, %c0_i32_14 : i32
    scf.if %24 {
      %c0_15 = arith.constant 0 : index
      %c0_16 = arith.constant 0 : index
      %25 = vector.load %arg5[%c0_15, %c0_16] : memref<8x256xf32, #tpu.memory_space<vmem>>, vector<8x256xf32>
      %26 = vector.shape_cast %25 : vector<8x256xf32> to vector<1x8x256xf32>
      %cst = arith.constant dense<0.000000e+00> : vector<1xf32>
      %27 = vector.multi_reduction <add>, %26, %cst [1, 2] : vector<1x8x256xf32> to vector<1xf32>
      %28 = vector.shape_cast %27 : vector<1xf32> to vector<1x1x1xf32>
      %29 = vector.extract %28[0, 0, 0] : f32 from vector<1x1x1xf32>
      %c0_17 = arith.constant 0 : index
      %c0_18 = arith.constant 0 : index
      %30 = vector.load %arg6[%c0_17, %c0_18] : memref<8x256xf32, #tpu.memory_space<vmem>>, vector<8x256xf32>
      %31 = vector.shape_cast %30 : vector<8x256xf32> to vector<1x8x256xf32>
      %cst_19 = arith.constant dense<0.000000e+00> : vector<1xf32>
      %32 = vector.multi_reduction <add>, %31, %cst_19 [1, 2] : vector<1x8x256xf32> to vector<1xf32>
      %33 = vector.shape_cast %32 : vector<1xf32> to vector<1x1x1xf32>
      %34 = vector.extract %33[0, 0, 0] : f32 from vector<1x1x1xf32>
      %35 = tpu.iota {dimensions = array<i32: 1>} : vector<1x2x128xi32>
      %c0_i32_20 = arith.constant 0 : i32
      %36 = vector.broadcast %c0_i32_20 : i32 to vector<1x2x128xi32>
      %37 = arith.cmpi eq, %35, %36 : vector<1x2x128xi32>
      %38 = vector.broadcast %29 : f32 to vector<1x2x128xf32>
      %39 = vector.broadcast %34 : f32 to vector<1x2x128xf32>
      %40 = arith.select %37, %38, %39 : vector<1x2x128xi1>, vector<1x2x128xf32>
      %c0_21 = arith.constant 0 : index
      %c0_22 = arith.constant 0 : index
      %c0_23 = arith.constant 0 : index
      %41 = vector.load %arg4[%c0_21, %c0_22, %c0_23] : memref<1x2x128xf32, #tpu.memory_space<vmem>>, vector<1x2x128xf32>
      tpu.vector_store %arg4[%c0_21, %c0_22, %c0_23], %40 {strides = array<i32>} : memref<1x2x128xf32, #tpu.memory_space<vmem>>, vector<1x2x128xf32>,
    } else {
    }
    return
  }
  func.func @transform_0(%arg0: i32, %arg1: i32) -> (i32, i32) {
    %c1_i32 = arith.constant 1 : i32
    %0 = arith.muli %arg0, %c1_i32 : i32
    %1 = arith.addi %0, %arg1 : i32
    %c0_i32 = arith.constant 0 : i32
    %c0_i32_0 = arith.constant 0 : i32
    return %1, %c0_i32 : i32, i32
  }
  func.func @transform_1(%arg0: i32, %arg1: i32) -> (i32, i32) {
    %c0_i32 = arith.constant 0 : i32
    %c0_i32_0 = arith.constant 0 : i32
    %c0_i32_1 = arith.constant 0 : i32
    return %c0_i32, %c0_i32_0 : i32, i32
  }
  func.func @transform_2(%arg0: i32, %arg1: i32) -> (i32, i32, i32) {
    %c0_i32 = arith.constant 0 : i32
    %c0_i32_0 = arith.constant 0 : i32
    %c0_i32_1 = arith.constant 0 : i32
    return %arg0, %c0_i32, %c0_i32_0 : i32, i32, i32
  }
}

</mosaic_0001>

<bundles_post_ra>
// kernel: tpu_custom_call.1
= control target key start
LH: loop header
LB: loop body
LE: loop exit
PB: predicated region body
PF: predicated region fallthrough
CT: control target
= control target key end

     0   :  { %7 = vsyncpa [#allocation5], 0  ;;  %s270_s0 = inlined_call_operand.hbm [shape: f32[8,256], index: 0, kind: input, shape index: {}]   ;;  %s271_s1 = inlined_call_operand.hbm [shape: f32[2,256], index: 1, kind: input, shape index: {}]   ;;  %s272_s2 = inlined_call_operand.hbm [shape: f32[1,2,128], index: 2, kind: output, shape index: {}]  }
   0x1   :  { %8 = vsyncpa [#allocation8], 0 }
   0x2   :  { %9 = vsyncpa [#allocation6], 0  ;;  %s241_s9 = smov [#allocation4]   ;;  %s242_s11 = smov [#allocation7]  }
   0x3   :  { %s20_s10 = sshll.u32 %s241_s9, 4  ;;  %s30_s12 = sshll.u32 %s242_s11, 4  ;;  %s21_s10 = int_to_ptr.vmem [resolvable:$true] %s20_s10  ;;  %s31_s12 = int_to_ptr.vmem [resolvable:$true] %s30_s12 }
   0x4   :  { %s183_s13 = scalar_lea.vmem %s21_s10, 256  ;;  %p188_p1 = scmp.lt.s32.totalorder %s21_s10, %s21_s10 }
   0x5   :  { %p184_p0 = scmp.ne.s32.totalorder %s21_s10, %s183_s13  ;;  %p189_p2 = scmp.lt.s32.totalorder %s183_s13, %s183_s13 }
   0x7   :  { %p190_p3 = por %p189_p2, %p188_p1 }
   0x9   :  { %p191_p4 = pnand %p190_p3, %p184_p0 }
   0xb   :  { %194 = shalt.err (!%p191_p4)
}
   0xc   :  { %23 = dma.hbm_to_vmem [thread:$0]  %s270_s0, 256, %s21_s10, [#allocation5]  }
   0xd   :  { %s203_s16 = scalar_lea.vmem %s31_s12, 64  ;;  %p208_p6 = scmp.lt.s32.totalorder %s31_s12, %s31_s12 }
   0xe   :  { %p204_p5 = scmp.ne.s32.totalorder %s31_s12, %s203_s16  ;;  %p209_p7 = scmp.lt.s32.totalorder %s203_s16, %s203_s16 }
  0x10   :  { %p210_p8 = por %p209_p7, %p208_p6 }
  0x12   :  { %p211_p9 = pnand %p210_p8, %p204_p5 }
  0x14   :  { %214 = shalt.err (!%p211_p9)
}
  0x15   :  { %33 = dma.hbm_to_vmem [thread:$0]  %s271_s1, 64, %s31_s12, [#allocation8]  }
  0x16   :  { %235 = dma.done.wait [#allocation5], 256  }
  0x17   :  { %236 = vsyncadd [#allocation5], 4294967040 }
  0x18   :  { %237 = dma.done.wait [#allocation8], 64  }
  0x19   :  { %238 = vsyncadd [#allocation8], 4294967232  ;;  %v49_v0 = vld [vmem:[#allocation4] sm:$0xff]  ;;  %s243_s19 = smov 112   ;;  %s244_s20 = smov 127   ;;  %v50_v1 = vld [vmem:[#allocation4 + $0x8] sm:$0xff]  ;;  %v55_v2 = vlaneseq }
  0x1a   :  { %60 = vrot.lane.b32.xlu1 %v49_v0, %s243_s19  ;;  %51 = vrot.lane.b32.xlu0 %v49_v0, %s244_s20  ;;  %v71_v9 = vld [vmem:[#allocation7] ss:$2 sm:$0x3]  ;;  %v73_v10 = vld [vmem:[#allocation7 + $0x1] ss:$2 sm:$0x3] }
  0x1b   :  { %v80_v3 = vshrl.u32 %v55_v2, 7  ;;  %v56_v4 = vand.u32 127, %v55_v2  ;;  %s245_s0 = smov [#allocation9]  }
  0x1c   :  { %s156_s1 = sshll.u32 %s245_s0, 4  ;;  %s157_s1 = int_to_ptr.vmem [resolvable:$true] %s156_s1 }
  0x1d   :  { %v81_v7 = vsub.s32 0, %v80_v3  ;;  %v85_v8 = vsub.s32 1, %v80_v3  ;;  %vm64_vm0 = vcmp.lt.s32.totalorder %v56_v4, 112  ;;  %vm57_vm1 = vcmp.lt.s32.totalorder %v56_v4, 127  ;;  %s215_s23 = scalar_lea.vmem %s157_s1, 32  ;;  %p220_p11 = scmp.lt.s32.totalorder %s157_s1, %s157_s1 }
  0x1e   :  { %62 = vrot.lane.b32.xlu1 %v50_v1, %s243_s19  ;;  %53 = vrot.lane.b32.xlu0 %v50_v1, %s244_s20  ;;  %vm145_vm2 = vcmp.eq.s32.totalorder %v80_v3, 0  ;;  %p216_p10 = scmp.ne.s32.totalorder %s157_s1, %s215_s23  ;;  %p221_p12 = scmp.lt.s32.totalorder %s215_s23, %s215_s23 }
  0x1f   :  { %v82_v13 = vrot.slane %v71_v9, %v81_v7  ;;  %v86_v14 = vrot.slane %v71_v9, %v85_v8  ;;  %v103_v15 = vrot.slane %v73_v10, %v81_v7  ;;  %v107_v16 = vrot.slane %v73_v10, %v85_v8 }
  0x20   :  { %p222_p13 = por %p221_p12, %p220_p11 }
  0x22   :  { %p223_p0 = pnand %p222_p13, %p216_p10 }
  0x8c   :  { %v61_v5 = vpop.permute.xlu1 %60  ;;  %v52_v6 = vpop.permute.xlu0 %51 }
  0x90   :  { %v63_v11 = vpop.permute.xlu1 %62  ;;  %v54_v12 = vpop.permute.xlu0 %53 }
  0x91   :  { %v65_v17 = vsel %vm64_vm0, %v61_v5, %v63_v11  ;;  %v66_v18 = vsel %vm64_vm0, %v63_v11, %v61_v5  ;;  %v58_v19 = vsel %vm57_vm1, %v52_v6, %v54_v12  ;;  %v59_v20 = vsel %vm57_vm1, %v54_v12, %v52_v6 }
  0x92   :  { %v69_v21 = vsub.f32 %v65_v17, %v49_v0  ;;  %v70_v22 = vsub.f32 %v66_v18, %v50_v1  ;;  %v67_v23 = vsub.f32 %v58_v19, %v49_v0  ;;  %v68_v24 = vsub.f32 %v59_v20, %v50_v1 }
  0x94   :  { %v76_v25 = vmul.f32 %v69_v21, %v69_v21  ;;  %v77_v26 = vmul.f32 %v70_v22, %v70_v22  ;;  %v97_v27 = vmul.f32 %v67_v23, %v67_v23  ;;  %v98_v28 = vmul.f32 %v68_v24, %v68_v24 }
  0x96   :  { %v89_v29 = vmul.f32 %v82_v13, %v76_v25  ;;  %v90_v30 = vmul.f32 %v86_v14, %v77_v26  ;;  %v110_v31 = vmul.f32 %v103_v15, %v97_v27  ;;  %v111_v32 = vmul.f32 %v107_v16, %v98_v28 }
  0x98   :  { %v121_v33 = vadd.f32 %v90_v30, %v89_v29  ;;  %v133_v34 = vadd.f32 %v111_v32, %v110_v31 }
  0x9a   :  { %122 = vadd.xlane.f32.xlu0 %v121_v33  ;;  %134 = vadd.xlane.f32.xlu1 %v133_v34 }
 0x123   :  { %v135_v35 = vpop.xlane.xlu1 %134  ;;  %v123_v36 = vpop.xlane.xlu0 %122 }
 0x124   :  { %v136_v37 = vrot.slane %v135_v35, 4  ;;  %v124_v38 = vrot.slane %v123_v36, 4 }
 0x126   :  { %v137_v39 = vadd.f32 %v136_v37, %v135_v35  ;;  %v125_v40 = vadd.f32 %v124_v38, %v123_v36 }
 0x128   :  { %v138_v41 = vrot.slane %v137_v39, 2  ;;  %v126_v42 = vrot.slane %v125_v40, 2 }
 0x12a   :  { %v139_v43 = vadd.f32 %v138_v41, %v137_v39  ;;  %v127_v44 = vadd.f32 %v126_v42, %v125_v40 }
 0x12c   :  { %v128_v45 = vrot.slane %v127_v44, 1  ;;  %v140_v46 = vrot.slane %v139_v43, 1 }
 0x12e   :  { %v129_v47 = vadd.f32 %v128_v45, %v127_v44  ;;  %v141_v48 = vadd.f32 %v140_v46, %v139_v43 }
 0x130   :  { %166 = vpush %v129_v47 }
 0x131   :  { %168 = vpush %v141_v48 }
 0x161   :  { %s167_s21 = spop %166 }
 0x162   :  { %v146_v49 = vstv %s167_s21  ;;  %s169_s22 = spop %168 }
 0x163   :  { %v147_v50 = vstv %s169_s22 }
 0x164   :  { %v148_v51 = vsel %vm145_vm2, %v146_v49, %v147_v50 }
 0x165   :  { %149 = vst [vmem:[#allocation9] sm:$0x3] %v148_v51 }
 0x166   :  { %226 = shalt.err (!%p223_p0)
}
 0x167   :  { %159 = dma.vmem_to_hbm [thread:$0]  %s157_s1, 32, %s272_s2, [#allocation6]  }
 0x168   :  { %239 = dma.done.wait [#allocation6], 32  }
 0x169   :  { %240 = vsyncadd [#allocation6], 4294967264 }
 0x16a   :  { %163 = vsyncpa [#allocation5], 1 }
 0x16b   :  { %164 = vsyncpa [#allocation8], 1 }
 0x16c   :  { %165 = vsyncpa [#allocation6], 1 }

</bundles_post_ra>
